<compile_context>
chip_gen: v5e
topology: v5e:2x2
jax: 0.10.0
libtpu: 0.0.40
codegen_flags: <defaults>
</compile_context>

<pallas_src>
import functools

import jax
import jax.numpy as jnp
from jax import lax
from jax.experimental import pallas as pl
from jax.experimental.pallas import tpu as pltpu


def _layernorm_kernel(*refs, eps, affine, m, m_padded):
    if affine:
        x_ref, g_ref, b_ref, o_ref = refs
    else:
        x_ref, o_ref = refs

    inv_m = 1.0 / m
    # torch std(dim, unbiased=True); m == 1 would be NaN in torch — guard only
    # the trace-time division (result for m == 1 is still degenerate, as in torch).
    inv_m1 = 1.0 / max(m - 1, 1)

    # Single full-block load; everything downstream reuses x / d. No reload of
    # x_ref and no (TB, M) f32 scale/shift temporaries.
    x = x_ref[...].astype(jnp.float32)                         # (TB, Mp)
    mean = jnp.sum(x, axis=-1, keepdims=True) * inv_m          # zero-padded lanes add 0
    d = x - mean                                               # (TB, Mp)

    if m_padded > m:
        # Padded lanes hold (0 - mean); mask them out of the variance sum.
        lane = lax.broadcasted_iota(jnp.int32, d.shape, dimension=1)
        dsq = jnp.where(lane < m, d, 0.0)
    else:
        dsq = d
    var = jnp.sum(dsq * dsq, axis=-1, keepdims=True) * inv_m1  # (TB, 1)

    # NOTE: the PyTorch module divides by (std + eps), NOT sqrt(var + eps).
    inv = pl.reciprocal(jnp.sqrt(var) + eps, approx=False)     # (TB, 1)

    # Fused normalize + affine directly on the centered value (better numerics
    # than the x*a + b rearrangement, and fewer full-block temporaries).
    y = d * inv
    if affine:
        y = y * g_ref[...].astype(jnp.float32) + b_ref[...].astype(jnp.float32)
    o_ref[...] = y.astype(o_ref.dtype)


def _pick_block_rows(n, m_padded, in_itemsize, vmem_budget_bytes=36 << 20):
    """Largest per-block row count that:
      - divides N,
      - keeps the per-block VMEM footprint (double-buffered in + out in the
        input dtype, plus ~3 f32 full-block temporaries inside the kernel body)
        under vmem_budget_bytes,
      - is sublane-pack aligned (8 for f32, 16 for bf16, 32 for int8) unless it
        equals N (full-dim blocks are always legal),
      - leaves >= ~4 grid steps when N is large enough, for software
        pipelining and to feed both TensorCores on v7x."""
    per_elem_bytes = 4 * in_itemsize + 3 * 4
    max_rows = max(1, int(vmem_budget_bytes) // (per_elem_bytes * m_padded))
    pack = max(8, 32 // in_itemsize)  # f32 -> 8, bf16 -> 16, int8 -> 32

    target_steps = 4
    desired = min(n, max_rows)
    if n >= target_steps * pack:
        desired = min(desired, max(pack, n // target_steps))

    for tb in range(max(1, desired), 0, -1):
        if n % tb == 0 and tb % pack == 0:
            return tb
    if n <= max_rows:
        return n  # whole batch dim in one block — always a legal block shape
    for tb in range(max(1, desired), 0, -1):
        if n % tb == 0:
            return tb
    return 1


def layer_norm(x, gamma=None, beta=None, *, eps=1e-5, affine=True):
    """Matches the PyTorch module's forward:
        y = (x - mean) / (std + eps) [* gamma + beta]
    with mean/std over all non-batch dims and std unbiased (ddof=1).
    x: (N, C, H, W). gamma/beta: (C,)."""
    N, C, H, W = x.shape
    HW = H * W
    M = C * HW
    Mp = ((M + 127) // 128) * 128  # lane-dense width -> unmasked vector stores

    # Lane-dense layout: one (zero-padded) row per sample.
    x2 = x.reshape(N, M)
    if Mp != M:
        x2 = jnp.pad(x2, ((0, 0), (0, Mp - M)))

    itemsize = jnp.dtype(x.dtype).itemsize
    tb = _pick_block_rows(N, Mp, itemsize)
    grid = (N // tb,)
    # TODO(synk): for small-N / huge-M shapes where tb falls below the sublane
    # pack, tile M as a trailing "arbitrary" grid axis with sum/sumsq VMEM
    # scratch instead of accepting 1..7-row (sublane-padded) blocks.

    kernel = functools.partial(
        _layernorm_kernel, eps=eps, affine=affine, m=M, m_padded=Mp)

    x_spec = pl.BlockSpec((tb, Mp), lambda i: (i, 0))
    out_spec = pl.BlockSpec((tb, Mp), lambda i: (i, 0))

    if affine:
        # Expand per-channel params to a lane-dense (1, Mp) row once (wrapper-side).
        g2 = jnp.broadcast_to(
            gamma.astype(jnp.float32).reshape(C, 1), (C, HW)
        ).reshape(1, M)
        b2 = jnp.broadcast_to(
            beta.astype(jnp.float32).reshape(C, 1), (C, HW)
        ).reshape(1, M)
        if Mp != M:
            g2 = jnp.pad(g2, ((0, 0), (0, Mp - M)))
            b2 = jnp.pad(b2, ((0, 0), (0, Mp - M)))
        p_spec = pl.BlockSpec((1, Mp), lambda i: (0, 0))
        args = (x2, g2, b2)
        in_specs = [x_spec, p_spec, p_spec]
    else:
        args = (x2,)
        in_specs = [x_spec]

    out = pl.pallas_call(
        kernel,
        out_shape=jax.ShapeDtypeStruct((N, Mp), x.dtype),
        grid_spec=pltpu.PrefetchScalarGridSpec(
            num_scalar_prefetch=0,
            grid=grid,
            in_specs=in_specs,
            out_specs=out_spec,
        ),
        compiler_params=pltpu.CompilerParams(
            # Batch axis is independent -> shard across both TCs on v7x;
            # harmless no-op on v5e/v6e.
            dimension_semantics=("parallel",),
            # Allow blocks above the per-gen scoped defaults (16/32 MiB) while
            # staying safely inside v7x's 64 MiB physical VMEM.
            vmem_limit_bytes=48 << 20,
        ),
    )(*args)

    if Mp != M:
        out = out[:, :M]
    return out.reshape(N, C, H, W)


def _reference(x, gamma, beta, eps=1e-5):
    # Pure-JAX reference mirroring the PyTorch forward exactly.
    N = x.shape[0]
    xf = x.reshape(N, -1).astype(jnp.float32)
    mean = xf.mean(axis=1).reshape(N, 1, 1, 1)
    std = xf.std(axis=1, ddof=1).reshape(N, 1, 1, 1)
    y = (x.astype(jnp.float32) - mean) / (std + eps)
    y = y * gamma.reshape(1, -1, 1, 1) + beta.reshape(1, -1, 1, 1)
    return y.astype(x.dtype)


if __name__ == "__main__":
    key = jax.random.PRNGKey(0)
    k_x, k_g = jax.random.split(key)

    N, C, H, W = 2, 4, 16, 16
    x = jax.random.normal(k_x, (N, C, H, W), dtype=jnp.float32)
    # Deterministic params matching torch init: gamma ~ U(0,1), beta = 0
    gamma = jax.random.uniform(k_g, (C,), dtype=jnp.float32)
    beta = jnp.zeros((C,), dtype=jnp.float32)

    y = layer_norm(x, gamma, beta, eps=1e-5, affine=True)
    y = jax.block_until_ready(y)

    y_ref = _reference(x, gamma, beta, eps=1e-5)
    assert jnp.allclose(y, y_ref, atol=1e-4, rtol=1e-4), "mismatch vs reference"

    print("KERNEL_OK")
</pallas_src>

<mosaic_0001>
module attributes {stable_mosaic.version = 11 : i64} {
  func.func @_layernorm_kernel(%arg0: i32, %arg1: memref<2x1024xf32, #tpu.memory_space<vmem>>, %arg2: memref<1x1024xf32, #tpu.memory_space<vmem>>, %arg3: memref<1x1024xf32, #tpu.memory_space<vmem>>, %arg4: memref<2x1024xf32, #tpu.memory_space<vmem>>) attributes {dimension_semantics = [#tpu.dimension_semantics<parallel>], iteration_bounds = array<i64: 1>, scalar_prefetch = 0 : i64, scratch_operands = 0 : i64, tpu.core_type = #tpu.core_type<tc>, window_params = [{transform_indices = @transform_0, window_bounds = array<i64: 2, 1024>}, {pipeline_mode = #tpu.pipeline_mode<synchronous>, transform_indices = @transform_1, window_bounds = array<i64: 1, 1024>}, {pipeline_mode = #tpu.pipeline_mode<synchronous>, transform_indices = @transform_2, window_bounds = array<i64: 1, 1024>}, {transform_indices = @transform_3, window_bounds = array<i64: 2, 1024>}]} {
    %c0 = arith.constant 0 : index
    %c0_0 = arith.constant 0 : index
    %0 = vector.load %arg1[%c0, %c0_0] : memref<2x1024xf32, #tpu.memory_space<vmem>>, vector<2x1024xf32>
    %cst = arith.constant dense<0.000000e+00> : vector<2xf32>
    %1 = vector.multi_reduction <add>, %0, %cst [1] : vector<2x1024xf32> to vector<2xf32>
    %2 = vector.shape_cast %1 : vector<2xf32> to vector<2x1xf32>
    %cst_1 = arith.constant 9.765625E-4 : f32
    %3 = vector.broadcast %cst_1 : f32 to vector<2x1xf32>
    %4 = arith.mulf %2, %3 : vector<2x1xf32>
    %5 = vector.broadcast %4 : vector<2x1xf32> to vector<2x1024xf32>
    %6 = arith.subf %0, %5 : vector<2x1024xf32>
    %7 = arith.mulf %6, %6 : vector<2x1024xf32>
    %cst_2 = arith.constant dense<0.000000e+00> : vector<2xf32>
    %8 = vector.multi_reduction <add>, %7, %cst_2 [1] : vector<2x1024xf32> to vector<2xf32>
    %9 = vector.shape_cast %8 : vector<2xf32> to vector<2x1xf32>
    %cst_3 = arith.constant 9.77517105E-4 : f32
    %10 = vector.broadcast %cst_3 : f32 to vector<2x1xf32>
    %11 = arith.mulf %9, %10 : vector<2x1xf32>
    %12 = math.sqrt %11 : vector<2x1xf32>
    %cst_4 = arith.constant 9.99999974E-6 : f32
    %13 = vector.broadcast %cst_4 : f32 to vector<2x1xf32>
    %14 = arith.addf %12, %13 : vector<2x1xf32>
    %15 = tpu.reciprocal %14 : vector<2x1xf32> -> vector<2x1xf32>
    %16 = vector.broadcast %15 : vector<2x1xf32> to vector<2x1024xf32>
    %17 = arith.mulf %6, %16 : vector<2x1024xf32>
    %c0_5 = arith.constant 0 : index
    %c0_6 = arith.constant 0 : index
    %18 = vector.load %arg2[%c0_5, %c0_6] : memref<1x1024xf32, #tpu.memory_space<vmem>>, vector<1x1024xf32>
    %19 = vector.broadcast %18 : vector<1x1024xf32> to vector<2x1024xf32>
    %20 = arith.mulf %17, %19 : vector<2x1024xf32>
    %c0_7 = arith.constant 0 : index
    %c0_8 = arith.constant 0 : index
    %21 = vector.load %arg3[%c0_7, %c0_8] : memref<1x1024xf32, #tpu.memory_space<vmem>>, vector<1x1024xf32>
    %22 = vector.broadcast %21 : vector<1x1024xf32> to vector<2x1024xf32>
    %23 = arith.addf %20, %22 : vector<2x1024xf32>
    %c0_9 = arith.constant 0 : index
    %c0_10 = arith.constant 0 : index
    %24 = vector.load %arg4[%c0_9, %c0_10] : memref<2x1024xf32, #tpu.memory_space<vmem>>, vector<2x1024xf32>
    tpu.vector_store %arg4[%c0_9, %c0_10], %23 {strides = array<i32>} : memref<2x1024xf32, #tpu.memory_space<vmem>>, vector<2x1024xf32>,
    return
  }
  func.func @transform_0(%arg0: i32) -> (i32, i32) {
    %c0_i32 = arith.constant 0 : i32
    %c0_i32_0 = arith.constant 0 : i32
    return %arg0, %c0_i32 : i32, i32
  }
  func.func @transform_1(%arg0: i32) -> (i32, i32) {
    %c0_i32 = arith.constant 0 : i32
    %c0_i32_0 = arith.constant 0 : i32
    %c0_i32_1 = arith.constant 0 : i32
    return %c0_i32, %c0_i32_0 : i32, i32
  }
  func.func @transform_2(%arg0: i32) -> (i32, i32) {
    %c0_i32 = arith.constant 0 : i32
    %c0_i32_0 = arith.constant 0 : i32
    %c0_i32_1 = arith.constant 0 : i32
    return %c0_i32, %c0_i32_0 : i32, i32
  }
  func.func @transform_3(%arg0: i32) -> (i32, i32) {
    %c0_i32 = arith.constant 0 : i32
    %c0_i32_0 = arith.constant 0 : i32
    return %arg0, %c0_i32 : i32, i32
  }
}

</mosaic_0001>

<bundles_post_ra>
// kernel: tpu_custom_call.1
= control target key start
LH: loop header
LB: loop body
LE: loop exit
PB: predicated region body
PF: predicated region fallthrough
CT: control target
= control target key end

     0   :  { %8 = vsyncpa [#allocation3], 0  ;;  %s449_s0 = inlined_call_operand.hbm [shape: f32[2,1024], index: 0, kind: input, shape index: {}]   ;;  %s450_s1 = inlined_call_operand.hbm [shape: f32[1,1024], index: 1, kind: input, shape index: {}]   ;;  %s451_s2 = inlined_call_operand.hbm [shape: f32[1,1024], index: 2, kind: input, shape index: {}]   ;;  %s452_s3 = inlined_call_operand.hbm [shape: f32[2,1024], index: 3, kind: output, shape index: {}]  }
   0x1   :  { %9 = vsyncpa [#allocation6], 0  ;;  %s27_s14 = sshll.u32 %s450_s1, 4  ;;  %s28_s14 = int_to_ptr.hbm [resolvable:$true] %s27_s14 }
   0x2   :  { %10 = vsyncpa [#allocation4], 0  ;;  %s367_s15 = smov [#allocation5]   ;;  %s16_s19 = sshll.u32 %s449_s0, 4  ;;  %s17_s19 = int_to_ptr.hbm [resolvable:$true] %s16_s19 }
   0x3   :  { %s29_s16 = sshll.u32 %s367_s15, 4  ;;  %s368_s20 = smov [#allocation2]   ;;  %s30_s16 = int_to_ptr.vmem [resolvable:$true] %s29_s16 }
   0x4   :  { %32 = dma.hbm_to_vmem [thread:$0]  %s28_s14, 128, %s30_s16, [#allocation6]  }
   0x5   :  { %s18_s21 = sshll.u32 %s368_s20, 4  ;;  %s38_s24 = sshll.u32 %s451_s2, 4  ;;  %s19_s21 = int_to_ptr.vmem [resolvable:$true] %s18_s21  ;;  %s39_s24 = int_to_ptr.hbm [resolvable:$true] %s38_s24 }
   0x6   :  { %21 = dma.hbm_to_vmem [thread:$0]  %s17_s19, 256, %s19_s21, [#allocation3]  }
   0x7   :  { %s369_s1 = smov [#allocation7]  }
   0x8   :  { %s40_s25 = sshll.u32 %s369_s1, 4  ;;  %s41_s25 = int_to_ptr.vmem [resolvable:$true] %s40_s25 }
   0x9   :  { %43 = dma.hbm_to_vmem [thread:$0]  %s39_s24, 128, %s41_s25, [#allocation6]  }
   0xa   :  { %361 = dma.done.wait [#allocation3], 256  }
   0xb   :  { %362 = vsyncadd [#allocation3], 4294967040 }
   0xc   :  { %363 = dma.done.wait [#allocation6], 256  }
   0xd   :  { %364 = vsyncadd [#allocation6], 4294967040  ;;  %v56_v0 = vld [vmem:[#allocation2] sm:$0xff]  ;;  %v57_v1 = vld [vmem:[#allocation2 + $0x8] sm:$0xff]  ;;  %vm79_vm0 = vcmask 1041408   ;;  %vm199_vm3 = vcmask 1045508  }
   0xe   :  { %60 = vst [vmem:[#allocation1] ss:$4 sm:$0xff] %v56_v0  ;;  %v370_v25 = vmov 269488144   ;;  %vm201_vm7 = vcmask 1043456   ;;  %s371_s0 = smov [#allocation8]  }
   0xf   :  { %62 = vst [vmem:[#allocation1 + $0x20] ss:$4 sm:$0xff] %v57_v1  ;;  %v409_v26 = vunpack.c.l.s4 %v370_v25  ;;  %s243_s2 = sshll.u32 %s371_s0, 4  ;;  %s245_s28 = sshll.u32 %s452_s3, 4  ;;  %s244_s2 = int_to_ptr.vmem [resolvable:$true] %s243_s2  ;;  %s246_s28 = int_to_ptr.hbm [resolvable:$true] %s245_s28 }
  0x11   :  { %v101_v27 = vunpack.c.0.s8 %v409_v26 }
  0x15   :  { %v63_v2 = vld.sshfl [vmem:[#allocation1] sm:$0xff pattern:$0x73625140]  ;;  %v64_v3 = vld.sshfl [vmem:[#allocation1 + $0x8] sm:$0xff pattern:$0x73625140] }
  0x16   :  { %v65_v4 = vld.sshfl [vmem:[#allocation1 + $0x10] sm:$0xff pattern:$0x73625140]  ;;  %v66_v5 = vld.sshfl [vmem:[#allocation1 + $0x18] sm:$0xff pattern:$0x73625140] }
  0x17   :  { %v80_v6 = vsel %vm79_vm0, %v63_v2, 0.0  ;;  %v81_v7 = vsel %vm79_vm0, %v64_v3, 0.0  ;;  %v83_v8 = vsel %vm79_vm0, %v65_v4, 0.0  ;;  %v67_v9 = vld.sshfl [vmem:[#allocation1 + $0x20] sm:$0xff pattern:$0x73625140] }
  0x18   :  { %v82_v10 = vadd.f32 %v81_v7, %v80_v6  ;;  %v85_v11 = vsel %vm79_vm0, %v66_v5, 0.0  ;;  %v68_v12 = vld.sshfl [vmem:[#allocation1 + $0x28] sm:$0xff pattern:$0x73625140]  ;;  %v87_v14 = vsel %vm79_vm0, %v67_v9, 0.0  ;;  %v182_v7 = vld [vmem:[#allocation5] sm:$0xff] }
  0x19   :  { %v69_v15 = vld.sshfl [vmem:[#allocation1 + $0x30] sm:$0xff pattern:$0x73625140]  ;;  %v89_v17 = vsel %vm79_vm0, %v68_v12, 0.0  ;;  %v186_v9 = vperm.slane %v182_v7, 2  ;;  %v190_v12 = vperm.slane %v182_v7, 6 }
  0x1a   :  { %v84_v13 = vadd.f32 %v83_v8, %v82_v10  ;;  %v70_v18 = vld.sshfl [vmem:[#allocation1 + $0x38] sm:$0xff pattern:$0x73625140]  ;;  %v91_v20 = vsel %vm79_vm0, %v69_v15, 0.0  ;;  %v185_v8 = vperm.slane %v182_v7, 1  ;;  %v187_v10 = vperm.slane %v182_v7, 3 }
  0x1b   :  { %v93_v22 = vsel %vm79_vm0, %v70_v18, 0.0  ;;  %v184_v15 = vperm.slane %v182_v7, 0 }
  0x1c   :  { %v86_v16 = vadd.f32 %v85_v11, %v84_v13  ;;  %v189_v11 = vperm.slane %v182_v7, 5  ;;  %v210_v13 = vld [vmem:[#allocation7] sm:$0xff]  ;;  %v192_v18 = vrot.slane %v185_v8, 6 }
  0x1d   :  { %v215_v25 = vperm.slane %v210_v13, 3 }
  0x1e   :  { %v88_v19 = vadd.f32 %v87_v14, %v86_v16  ;;  %v188_v16 = vperm.slane %v182_v7, 4 }
  0x20   :  { %v90_v21 = vadd.f32 %v89_v17, %v88_v19  ;;  %v191_v17 = vperm.slane %v182_v7, 7 }
  0x22   :  { %v92_v23 = vadd.f32 %v91_v20, %v90_v21  ;;  %v193_v20 = vrot.slane %v186_v9, 4  ;;  %v194_v21 = vrot.slane %v187_v10, 2 }
  0x24   :  { %v94_v24 = vadd.f32 %v93_v22, %v92_v23  ;;  %v195_v22 = vrot.slane %v189_v11, 6  ;;  %v213_v23 = vperm.slane %v210_v13, 1 }
  0x26   :  { %95 = vadd.xlane.f32.xlu0 %v94_v24  ;;  %v214_v24 = vperm.slane %v210_v13, 2 }
  0x99   :  { %v96_v28 = vpop.xlane.xlu0 %95 }
  0x9a   :  { %v97_v29 = vmul.f32 0.0009765625, %v96_v28  ;;  %v217_v28 = vperm.slane %v210_v13, 5 }
  0x9c   :  { %v102_v30 = vperm.slane %v97_v29, %v101_v27 }
  0x9e   :  { %v414_v31 = vsub.f32 %v56_v0, %v102_v30  ;;  %v416_v32 = vsub.f32 %v57_v1, %v102_v30  ;;  %v196_v30 = vrot.slane %v190_v12, 4 }
  0xa0   :  { %v106_v33 = vmul.f32 %v414_v31, %v414_v31  ;;  %v107_v34 = vmul.f32 %v416_v32, %v416_v32 }
  0xa2   :  { %110 = vst [vmem:[#allocation1] ss:$4 sm:$0xff] %v106_v33  ;;  %v218_v33 = vperm.slane %v210_v13, 6 }
  0xa3   :  { %112 = vst [vmem:[#allocation1 + $0x20] ss:$4 sm:$0xff] %v107_v34  ;;  %v219_v34 = vperm.slane %v210_v13, 7 }
  0xa9   :  { %v113_v35 = vld.sshfl [vmem:[#allocation1] sm:$0xff pattern:$0x73625140]  ;;  %v114_v36 = vld.sshfl [vmem:[#allocation1 + $0x8] sm:$0xff pattern:$0x73625140] }
  0xaa   :  { %v115_v37 = vld.sshfl [vmem:[#allocation1 + $0x10] sm:$0xff pattern:$0x73625140]  ;;  %v129_v38 = vsel %vm79_vm0, %v113_v35, 0.0  ;;  %v130_v39 = vsel %vm79_vm0, %v114_v36, 0.0  ;;  %v197_v36 = vrot.slane %v191_v17, 2 }
  0xab   :  { %v116_v40 = vld.sshfl [vmem:[#allocation1 + $0x18] sm:$0xff pattern:$0x73625140]  ;;  %v131_v41 = vadd.f32 %v130_v39, %v129_v38  ;;  %v132_v42 = vsel %vm79_vm0, %v115_v37, 0.0  ;;  %v212_v37 = vperm.slane %v210_v13, 0 }
  0xac   :  { %v117_v43 = vld.sshfl [vmem:[#allocation1 + $0x20] sm:$0xff pattern:$0x73625140]  ;;  %v134_v45 = vsel %vm79_vm0, %v116_v40, 0.0  ;;  %v216_v40 = vperm.slane %v210_v13, 4 }
  0xad   :  { %v133_v44 = vadd.f32 %v132_v42, %v131_v41  ;;  %v118_v46 = vld.sshfl [vmem:[#allocation1 + $0x28] sm:$0xff pattern:$0x73625140]  ;;  %v136_v48 = vsel %vm79_vm0, %v117_v43, 0.0  ;;  %v220_v41 = vrot.slane %v213_v23, 6  ;;  %v221_v42 = vrot.slane %v214_v24, 4 }
  0xae   :  { %v119_v49 = vld.sshfl [vmem:[#allocation1 + $0x30] sm:$0xff pattern:$0x73625140]  ;;  %v138_v51 = vsel %vm79_vm0, %v118_v46, 0.0  ;;  %v222_v43 = vrot.slane %v215_v25, 2  ;;  %v224_v46 = vrot.slane %v218_v33, 4 }
  0xaf   :  { %v135_v47 = vadd.f32 %v134_v45, %v133_v44  ;;  %v120_v52 = vld.sshfl [vmem:[#allocation1 + $0x38] sm:$0xff pattern:$0x73625140]  ;;  %v140_v54 = vsel %vm79_vm0, %v119_v49, 0.0  ;;  %v223_v44 = vrot.slane %v217_v28, 6  ;;  %v198_v49 = vsel %vm79_vm0, %v184_v15, %v192_v18 }
  0xb0   :  { %v142_v56 = vsel %vm79_vm0, %v120_v52, 0.0  ;;  %v203_v52 = vsel %vm79_vm0, %v188_v16, %v195_v22 }
  0xb1   :  { %v137_v50 = vadd.f32 %v136_v48, %v135_v47  ;;  %v225_v47 = vrot.slane %v219_v34, 2 }
  0xb3   :  { %v139_v53 = vadd.f32 %v138_v51, %v137_v50  ;;  %v200_v50 = vsel %vm199_vm3, %v193_v20, %v194_v21 }
  0xb5   :  { %v141_v55 = vadd.f32 %v140_v54, %v139_v53  ;;  %v204_v53 = vsel %vm199_vm3, %v196_v30, %v197_v36 }
  0xb7   :  { %v143_v57 = vadd.f32 %v142_v56, %v141_v55  ;;  %v226_v55 = vsel %vm79_vm0, %v212_v37, %v220_v41 }
  0xb9   :  { %144 = vadd.xlane.f32.xlu0 %v143_v57  ;;  %v227_v57 = vsel %vm199_vm3, %v221_v42, %v222_v43 }
 0x12c   :  { %v145_v58 = vpop.xlane.xlu0 %144 }
 0x12d   :  { %v146_v59 = vmul.f32 0.0009775171, %v145_v58  ;;  %v229_v58 = vsel %vm79_vm0, %v216_v40, %v223_v44 }
 0x12f   :  { %261 = vrsqrt.f32 %v146_v59  ;;  %vm154_vm1 = vcmp.eq.f32.partialorder %v146_v59, inf  ;;  %v157_v3 = vand.u32 2147483648, %v146_v59  ;;  %vm156_vm2 = vcmp.eq.f32.partialorder %v146_v59, 0.0 }
 0x135   :  { %v262_v60 = vpop.eup %261 }
 0x136   :  { %v148_v61 = vmul.f32 %v262_v60, %v146_v59 }
 0x138   :  { %v149_v62 = vmul.f32 %v262_v60, %v148_v61  ;;  %v205_v61 = vsel %vm201_vm7, %v203_v52, %v204_v53 }
 0x13a   :  { %v150_v63 = vmul.f32 0.5, %v149_v62 }
 0x13c   :  { %v151_v0 = vsub.f32 1.5, %v150_v63 }
 0x13e   :  { %v152_v1 = vmul.f32 %v262_v60, %v151_v0  ;;  %v202_v60 = vsel %vm201_vm7, %v198_v49, %v200_v50  ;;  %v228_v0 = vsel %vm201_vm7, %v226_v55, %v227_v57 }
 0x140   :  { %v153_v2 = vmul.f32 %v152_v1, %v146_v59 }
 0x142   :  { %v155_v4 = vsel %vm154_vm1, %v146_v59, %v153_v2  ;;  %v230_v59 = vsel %vm199_vm3, %v224_v46, %v225_v47 }
 0x143   :  { %v158_v5 = vsel %vm156_vm2, %v157_v3, %v155_v4  ;;  %v231_v1 = vsel %vm201_vm7, %v229_v58, %v230_v59 }
 0x144   :  { %v159_v6 = vadd.f32 1e-05, %v158_v5 }
 0x146   :  { %263 = vrcp.f32 %v159_v6  ;;  %v171_v35 = vand.u32 2147483648, %v159_v6  ;;  %v169_v39 = vand.u32 2147483647, %v159_v6  ;;  %vm165_vm5 = vweird.f32 %v159_v6 }
 0x148   :  { %v172_v48 = vor.u32 1.1754944e-38, %v171_v35  ;;  %vm170_vm8 = vcmp.eq.f32.partialorder %v169_v39, 8.507059e+37 }
 0x14c   :  { %v264_v14 = vpop.eup %263 }
 0x14d   :  { %v161_v19 = vmul.f32 %v264_v14, %v159_v6  ;;  %vm166_vm4 = vweird.f32 %v264_v14 }
 0x14e   :  { %vm167_vm6 = vmor %vm165_vm5, %vm166_vm4 }
 0x14f   :  { %v162_v29 = vsub.f32 1.0, %v161_v19 }
 0x151   :  { %v163_v38 = vmul.f32 %v264_v14, %v162_v29 }
 0x153   :  { %v164_v45 = vadd.f32 %v264_v14, %v163_v38 }
 0x155   :  { %v168_v51 = vsel %vm167_vm6, %v264_v14, %v164_v45 }
 0x156   :  { %v173_v54 = vsel %vm170_vm8, %v172_v48, %v168_v51 }
 0x157   :  { %v178_v56 = vperm.slane %v173_v54, %v101_v27 }
 0x159   :  { %v180_v62 = vmul.f32 %v178_v56, %v414_v31  ;;  %v181_v63 = vmul.f32 %v178_v56, %v416_v32 }
 0x15b   :  { %v208_v26 = vmul.f32 %v202_v60, %v180_v62  ;;  %v209_v27 = vmul.f32 %v205_v61, %v181_v63 }
 0x15d   :  { %v234_v2 = vadd.f32 %v228_v0, %v208_v26  ;;  %v235_v3 = vadd.f32 %v231_v1, %v209_v27 }
 0x15f   :  { %236 = vst [vmem:[#allocation8] sm:$0xff] %v234_v2 }
 0x160   :  { %237 = vst [vmem:[#allocation8 + $0x8] sm:$0xff] %v235_v3 }
 0x161   :  { %248 = dma.vmem_to_hbm [thread:$0]  %s244_s2, 256, %s246_s28, [#allocation4]  }
 0x162   :  { %365 = dma.done.wait [#allocation4], 256  }
 0x163   :  { %366 = vsyncadd [#allocation4], 4294967040 }
 0x164   :  { %253 = vsyncpa [#allocation3], 1 }
 0x165   :  { %254 = vsyncpa [#allocation6], 1 }
 0x166   :  { %255 = vsyncpa [#allocation4], 1 }

</bundles_post_ra>
